<compile_context>
chip_gen: v7x
topology: tpu7x:2x2x1
jax: 0.10.0
libtpu: 0.0.40
codegen_flags: <defaults>
</compile_context>

<pallas_src>
import functools

import numpy as np
import jax
import jax.numpy as jnp
from jax import lax
from jax.experimental import pallas as pl
from jax.experimental.pallas import tpu as pltpu


_DILATIONS = (1, 2, 4, 8)
_DMAX = max(_DILATIONS)

# Explicit scoped-VMEM budget: above the 16/32 MiB defaults, below v7x's 64 MiB.
_CP = pltpu.CompilerParams(dimension_semantics=("parallel",),
                           vmem_limit_bytes=48 * 1024 * 1024)


# ----------------------------------------------------------------------------
# Pallas kernels
# ----------------------------------------------------------------------------
def _conv3x3_kernel(x_ref, w_ref, b_ref, o_ref, pad_ref, *, H, W):
    """3x3 conv (pad=1) + folded-BN + ReLU as 9 accumulated per-tap matmuls.

    x_ref  : (1, H, W, Cin)     bf16
    w_ref  : (9, Cin, Cout)     bf16   (BN scale folded in)
    b_ref  : (1, Cout)          f32
    o_ref  : (1, H*W, Cout)     bf16
    pad_ref: (H+2, W+2, Cin)    bf16 VMEM scratch (halo of 1)
    """
    Cin = x_ref.shape[3]
    Cout = o_ref.shape[2]
    Wp = W + 2
    # Zero only the halo border (interior is fully rewritten below).
    pad_ref[0:1, :, :] = jnp.zeros((1, Wp, Cin), jnp.bfloat16)
    pad_ref[H + 1:H + 2, :, :] = jnp.zeros((1, Wp, Cin), jnp.bfloat16)
    pad_ref[1:H + 1, 0:1, :] = jnp.zeros((H, 1, Cin), jnp.bfloat16)
    pad_ref[1:H + 1, W + 1:W + 2, :] = jnp.zeros((H, 1, Cin), jnp.bfloat16)
    pad_ref[1:1 + H, 1:1 + W, :] = x_ref[0]

    acc = jnp.zeros((H * W, Cout), jnp.float32)
    for k in range(9):                      # per-tap accumulation, K = Cin each
        ky, kx = k // 3, k % 3
        tap = pad_ref[ky:ky + H, kx:kx + W, :].reshape(H * W, Cin)
        acc = acc + jnp.dot(tap, w_ref[k], preferred_element_type=jnp.float32)
    o_ref[0] = jnp.maximum(acc + b_ref[...], 0.0).astype(o_ref.dtype)


def _fused_dilation_kernel(f5_ref, f4_ref, f3_ref, a5_ref, a4_ref, w_ref, b_ref,
                           o_ref, pad5_ref, pad4_ref, pad3_ref, *, H, W, width):
    """Bilinear upsample of f4/f5 + all four SeparableConv2d(+BN+ReLU) dilation
    branches, fully in VMEM.

    f5_ref : (1, H5*W5, width)            bf16  (low-res conv5 output, flat spatial)
    f4_ref : (1, H4*W4, width)            bf16
    f3_ref : (1, H, W, width)             bf16  (high-res conv3 output)
    a5_ref : (H*W, H5*W5)                 bf16  Kronecker bilinear matrix (align_corners)
    a4_ref : (H*W, H4*W4)                 bf16
    w_ref  : (4, 27, width, width)        bf16  [branch, tap*3+source, cin_blk, cout]
    b_ref  : (4, 1, width)                f32
    o_ref  : (1, H*W, 4*width)            f32
    pad*_ref: (H+2*DMAX, W+2*DMAX, width) bf16 scratch (one per source)
    """
    D = _DMAX
    Wp = W + 2 * D
    pads = (pad5_ref, pad4_ref, pad3_ref)          # channel order = [f5u, f4u, f3]

    # Zero only the halo border every step (interior fully rewritten below).
    zrow = jnp.zeros((D, Wp, width), jnp.bfloat16)
    zcol = jnp.zeros((H, D, width), jnp.bfloat16)
    for p in pads:
        p[0:D, :, :] = zrow
        p[D + H:D + H + D, :, :] = zrow
        p[D:D + H, 0:D, :] = zcol
        p[D:D + H, D + W:D + W + D, :] = zcol

    # Fused bilinear upsample: one small-K MXU matmul per low-res source, result
    # written straight into the padded scratch (no HBM round trip for f4u/f5u).
    f5u = jnp.dot(a5_ref[...], f5_ref[0], preferred_element_type=jnp.float32)
    f4u = jnp.dot(a4_ref[...], f4_ref[0], preferred_element_type=jnp.float32)
    pad5_ref[D:D + H, D:D + W, :] = f5u.astype(jnp.bfloat16).reshape(H, W, width)
    pad4_ref[D:D + H, D:D + W, :] = f4u.astype(jnp.bfloat16).reshape(H, W, width)
    pad3_ref[D:D + H, D:D + W, :] = f3_ref[0]

    # Four dilation branches: per-tap, per-source accumulated matmuls into an f32
    # accumulator; each branch written directly into its output slab (no concat).
    for i, d in enumerate(_DILATIONS):
        acc = jnp.zeros((H * W, width), jnp.float32)
        for k in range(9):
            ky, kx = k // 3, k % 3
            y0 = D + (ky - 1) * d
            x0 = D + (kx - 1) * d
            for s, p in enumerate(pads):
                tap = p[y0:y0 + H, x0:x0 + W, :].reshape(H * W, width)
                acc = acc + jnp.dot(tap, w_ref[i, k * 3 + s],
                                    preferred_element_type=jnp.float32)
        o_ref[0, :, i * width:(i + 1) * width] = jnp.maximum(acc + b_ref[i], 0.0)


# ----------------------------------------------------------------------------
# Pallas wrappers
# ----------------------------------------------------------------------------
def conv3x3_bn_relu(x, w9, bias):
    """x: (B, H, W, Cin) bf16 -> (B, H*W, Cout) bf16."""
    B, H, W, Cin = x.shape
    Cout = w9.shape[-1]
    return pl.pallas_call(
        functools.partial(_conv3x3_kernel, H=H, W=W),
        out_shape=jax.ShapeDtypeStruct((B, H * W, Cout), jnp.bfloat16),
        grid=(B,),
        in_specs=[
            pl.BlockSpec((1, H, W, Cin), lambda b: (b, 0, 0, 0)),
            pl.BlockSpec((9, Cin, Cout), lambda b: (0, 0, 0)),
            pl.BlockSpec((1, Cout), lambda b: (0, 0)),
        ],
        out_specs=pl.BlockSpec((1, H * W, Cout), lambda b: (b, 0, 0)),
        scratch_shapes=[pltpu.VMEM((H + 2, W + 2, Cin), jnp.bfloat16)],
        compiler_params=_CP,
    )(x, w9, bias)


def fused_upsample_dilations(f5, f4, f3_img, a5, a4, w_stack, b_stack):
    """f5: (B,K5,width), f4: (B,K4,width), f3_img: (B,H,W,width) — all bf16.
    Returns (B, H*W, 4*width) f32."""
    B, H, W, width = f3_img.shape
    K5 = f5.shape[1]
    K4 = f4.shape[1]
    return pl.pallas_call(
        functools.partial(_fused_dilation_kernel, H=H, W=W, width=width),
        out_shape=jax.ShapeDtypeStruct((B, H * W, 4 * width), jnp.float32),
        grid=(B,),
        in_specs=[
            pl.BlockSpec((1, K5, width), lambda b: (b, 0, 0)),
            pl.BlockSpec((1, K4, width), lambda b: (b, 0, 0)),
            pl.BlockSpec((1, H, W, width), lambda b: (b, 0, 0, 0)),
            pl.BlockSpec((H * W, K5), lambda b: (0, 0)),
            pl.BlockSpec((H * W, K4), lambda b: (0, 0)),
            pl.BlockSpec((4, 27, width, width), lambda b: (0, 0, 0, 0)),
            pl.BlockSpec((4, 1, width), lambda b: (0, 0, 0)),
        ],
        out_specs=pl.BlockSpec((1, H * W, 4 * width), lambda b: (b, 0, 0)),
        scratch_shapes=[
            pltpu.VMEM((H + 2 * _DMAX, W + 2 * _DMAX, width), jnp.bfloat16),
            pltpu.VMEM((H + 2 * _DMAX, W + 2 * _DMAX, width), jnp.bfloat16),
            pltpu.VMEM((H + 2 * _DMAX, W + 2 * _DMAX, width), jnp.bfloat16),
        ],
        compiler_params=_CP,
    )(f5, f4, f3_img, a5, a4, w_stack, b_stack)


# ----------------------------------------------------------------------------
# Bilinear (align_corners=True) interpolation matrices (static, numpy)
# ----------------------------------------------------------------------------
def _interp_matrix_np(out_size, in_size):
    m = np.zeros((out_size, in_size), np.float64)
    if out_size == 1:
        src = np.zeros((out_size,), np.float64)
    else:
        src = np.arange(out_size, dtype=np.float64) * (in_size - 1) / (out_size - 1)
    lo = np.clip(np.floor(src).astype(np.int64), 0, in_size - 1)
    hi = np.minimum(lo + 1, in_size - 1)
    frac = src - lo
    m[np.arange(out_size), lo] += (1.0 - frac)
    m[np.arange(out_size), hi] += frac
    return m


def _kron_interp_matrix(hout, wout, hin, win):
    """(hout*wout, hin*win) bilinear matrix: A[(h*wout+w),(p*win+v)] = Ah[h,p]*Aw[w,v]."""
    a = np.kron(_interp_matrix_np(hout, hin), _interp_matrix_np(wout, win))
    return jnp.asarray(a.astype(np.float32)).astype(jnp.bfloat16)


# ----------------------------------------------------------------------------
# JPU forward (Pallas path)
# ----------------------------------------------------------------------------
def jpu_forward(inputs_nchw, folded):
    """inputs_nchw: list of 3 NCHW tensors (shallow -> deep).  Returns the same tuple
    structure as the PyTorch module: (inputs[0], inputs[1], inputs[2], feat)."""
    xs = [jnp.transpose(x, (0, 2, 3, 1)).astype(jnp.bfloat16) for x in inputs_nchw]
    width = folded['dil_b'].shape[-1]

    f5 = conv3x3_bn_relu(xs[-1], *folded['conv5'])   # (B, H5*W5, width) — deepest
    f4 = conv3x3_bn_relu(xs[-2], *folded['conv4'])   # (B, H4*W4, width)
    f3 = conv3x3_bn_relu(xs[-3], *folded['conv3'])   # (B, H *W , width) — highest res

    B, H, W = xs[-3].shape[0], xs[-3].shape[1], xs[-3].shape[2]
    H4, W4 = xs[-2].shape[1], xs[-2].shape[2]
    H5, W5 = xs[-1].shape[1], xs[-1].shape[2]

    a5 = _kron_interp_matrix(H, W, H5, W5)
    a4 = _kron_interp_matrix(H, W, H4, W4)

    feat2 = fused_upsample_dilations(f5, f4, f3.reshape(B, H, W, width),
                                     a5, a4, folded['dil_w'], folded['dil_b'])
    # NHWC -> NCHW to preserve the module's output layout.
    # TODO(synk): skip this full extra HBM pass if the consumer accepts NHWC.
    feat2_nchw = jnp.transpose(feat2.reshape(B, H, W, 4 * width), (0, 3, 1, 2))
    return inputs_nchw[0], inputs_nchw[1], inputs_nchw[2], feat2_nchw


# ----------------------------------------------------------------------------
# Parameter init + folding (BN + separable-conv fused into dense matmul weights)
# ----------------------------------------------------------------------------
def _bn_affine(key, c, eps=1e-5):
    k1, k2, k3, k4 = jax.random.split(key, 4)
    gamma = jax.random.uniform(k1, (c,), jnp.float32, 0.5, 1.5)
    beta = jax.random.normal(k2, (c,), jnp.float32) * 0.1
    mean = jax.random.normal(k3, (c,), jnp.float32) * 0.1
    var = jax.random.uniform(k4, (c,), jnp.float32, 0.5, 1.5)
    scale = gamma / jnp.sqrt(var + eps)
    bias = beta - mean * scale
    return scale, bias


def init_params(key, in_channels, width):
    params = {}
    keys = jax.random.split(key, 32)
    ki = iter(keys)
    for name, cin in (('conv5', in_channels[-1]),
                      ('conv4', in_channels[-2]),
                      ('conv3', in_channels[-3])):
        w = jax.random.normal(next(ki), (3, 3, cin, width), jnp.float32) * 0.1
        s, b = _bn_affine(next(ki), width)
        params[name] = (w, s, b)
    cin = 3 * width
    for i in range(1, 5):
        dw = jax.random.normal(next(ki), (3, 3, cin), jnp.float32) * 0.1
        s1, b1 = _bn_affine(next(ki), cin)
        pw = jax.random.normal(next(ki), (cin, width), jnp.float32) * 0.1
        s2, b2 = _bn_affine(next(ki), width)
        params['dilation%d' % i] = (dw, s1, b1, pw, s2, b2)
    return params


def fold_params(params, width):
    """Fold BN affines and the depthwise+pointwise pair into bf16 matmul weights and
    f32 biases (used by BOTH the Pallas path and the reference, so numerics match)."""
    folded = {}
    for name in ('conv5', 'conv4', 'conv3'):
        w, s, b = params[name]
        cin = w.shape[2]
        w9 = (w * s.reshape(1, 1, 1, -1)).reshape(9, cin, width).astype(jnp.bfloat16)
        folded[name] = (w9, b.reshape(1, width))
    cin = 3 * width
    ws, bs = [], []
    for i in range(1, 5):
        dw, s1, b1, pw, s2, b2 = params['dilation%d' % i]
        # dense[k, c, o] = dw[k, c] * s1[c] * pw[c, o] * s2[o]
        dense = (dw.reshape(9, cin, 1) * s1.reshape(1, cin, 1)
                 * pw.reshape(1, cin, width) * s2.reshape(1, 1, width))
        # -> (27, width, width): index [tap*3 + source, cin_block, cout]
        ws.append(dense.reshape(9, 3, width, width)
                  .reshape(27, width, width).astype(jnp.bfloat16))
        bias = (b1.reshape(1, cin) @ pw) * s2.reshape(1, width) + b2.reshape(1, width)
        bs.append(bias)
    folded['dil_w'] = jnp.stack(ws, axis=0)       # (4, 27, width, width)  bf16
    folded['dil_b'] = jnp.stack(bs, axis=0)       # (4, 1, width)          f32
    return folded


# ----------------------------------------------------------------------------
# Plain-JAX reference (same folded bf16 params / same rounding points)
# ----------------------------------------------------------------------------
def _ref_conv_dense(x_bf16, w_hwio, bias, dilation=1):
    d = dilation
    y = lax.conv_general_dilated(x_bf16, w_hwio, (1, 1), [(d, d), (d, d)],
                                 rhs_dilation=(d, d),
                                 dimension_numbers=('NHWC', 'HWIO', 'NHWC'),
                                 preferred_element_type=jnp.float32)
    return jnp.maximum(y + bias.reshape(1, 1, 1, -1), 0.0)


def jpu_reference(inputs_nchw, folded):
    xs = [jnp.transpose(x, (0, 2, 3, 1)).astype(jnp.bfloat16) for x in inputs_nchw]
    width = folded['dil_b'].shape[-1]

    def conv_ref(x, w9, bias):
        cin = w9.shape[1]
        return _ref_conv_dense(x, w9.reshape(3, 3, cin, width), bias).astype(jnp.bfloat16)

    f5 = conv_ref(xs[-1], *folded['conv5'])
    f4 = conv_ref(xs[-2], *folded['conv4'])
    f3 = conv_ref(xs[-3], *folded['conv3'])
    B, h, w, _ = f3.shape

    def up(f):
        Bi, hi, wi, c = f.shape
        A = _kron_interp_matrix(h, w, hi, wi)
        y = jnp.einsum('ok,bkc->boc', A, f.reshape(Bi, hi * wi, c),
                       preferred_element_type=jnp.float32)
        return y.astype(jnp.bfloat16).reshape(Bi, h, w, c)

    feat = jnp.concatenate([up(f5), up(f4), f3], axis=-1)
    cin = 3 * width
    outs = []
    for i, d in enumerate(_DILATIONS):
        wd = folded['dil_w'][i].reshape(3, 3, cin, width)
        outs.append(_ref_conv_dense(feat, wd, folded['dil_b'][i], dilation=d))
    feat2 = jnp.transpose(jnp.concatenate(outs, axis=-1), (0, 3, 1, 2))
    return inputs_nchw[0], inputs_nchw[1], inputs_nchw[2], feat2


# ----------------------------------------------------------------------------
# Main
# ----------------------------------------------------------------------------
if __name__ == "__main__":
    key = jax.random.PRNGKey(0)
    B = 2
    in_channels = (8, 16, 32)   # channels of inputs[-3], inputs[-2], inputs[-1]
    width = 8

    # PyTorch NCHW inputs (shallow / high-res -> deep / low-res pyramid)
    shapes = [(B, 8, 16, 16), (B, 16, 8, 8), (B, 32, 4, 4)]
    keys = jax.random.split(key, 8)
    inputs = [jax.random.normal(keys[i], s, jnp.float32) for i, s in enumerate(shapes)]

    params = init_params(keys[4], in_channels, width)
    folded = fold_params(params, width)

    outs = jax.block_until_ready(jpu_forward(inputs, folded))

    # Sanity-check against a plain-JAX reference of the same (folded, bf16) math.
    refs = jax.block_until_ready(jpu_reference(inputs, folded))
    for a, b in zip(outs, refs):
        assert a.shape == b.shape, (a.shape, b.shape)
        assert jnp.allclose(a, b, atol=1e-2, rtol=1e-2), "Pallas JPU mismatch vs reference"

    print("KERNEL_OK")
</pallas_src>

<mosaic_0001>
module attributes {stable_mosaic.version = 11 : i64} {
  func.func @_conv3x3_kernel(%arg0: i32, %arg1: memref<1x4x4x32xbf16, #tpu.memory_space<vmem>>, %arg2: memref<9x32x8xbf16, #tpu.memory_space<vmem>>, %arg3: memref<1x8xf32, #tpu.memory_space<vmem>>, %arg4: memref<1x16x8xbf16, #tpu.memory_space<vmem>>, %arg5: memref<6x6x32xbf16, #tpu.memory_space<vmem>>) attributes {dimension_semantics = [#tpu.dimension_semantics<parallel>], iteration_bounds = array<i64: 2>, scalar_prefetch = 0 : i64, scratch_operands = 1 : i64, tpu.core_type = #tpu.core_type<tc>, window_params = [{transform_indices = @transform_0, window_bounds = array<i64: 1, 4, 4, 32>}, {pipeline_mode = #tpu.pipeline_mode<synchronous>, transform_indices = @transform_1, window_bounds = array<i64: 9, 32, 8>}, {pipeline_mode = #tpu.pipeline_mode<synchronous>, transform_indices = @transform_2, window_bounds = array<i64: 1, 8>}, {transform_indices = @transform_3, window_bounds = array<i64: 1, 16, 8>}]} {
    %cst = arith.constant 0.000000e+00 : bf16
    %0 = vector.broadcast %cst : bf16 to vector<1x6x32xbf16>
    %c0 = arith.constant 0 : index
    %c0_0 = arith.constant 0 : index
    %c0_1 = arith.constant 0 : index
    %1 = vector.load %arg5[%c0, %c0_0, %c0_1] : memref<6x6x32xbf16, #tpu.memory_space<vmem>>, vector<1x6x32xbf16>
    tpu.vector_store %arg5[%c0, %c0_0, %c0_1], %0 {strides = array<i32>} : memref<6x6x32xbf16, #tpu.memory_space<vmem>>, vector<1x6x32xbf16>,
    %cst_2 = arith.constant 0.000000e+00 : bf16
    %2 = vector.broadcast %cst_2 : bf16 to vector<1x6x32xbf16>
    %c5 = arith.constant 5 : index
    %c0_3 = arith.constant 0 : index
    %c0_4 = arith.constant 0 : index
    %3 = vector.load %arg5[%c5, %c0_3, %c0_4] : memref<6x6x32xbf16, #tpu.memory_space<vmem>>, vector<1x6x32xbf16>
    tpu.vector_store %arg5[%c5, %c0_3, %c0_4], %2 {strides = array<i32>} : memref<6x6x32xbf16, #tpu.memory_space<vmem>>, vector<1x6x32xbf16>,
    %cst_5 = arith.constant 0.000000e+00 : bf16
    %4 = vector.broadcast %cst_5 : bf16 to vector<4x1x32xbf16>
    %c1 = arith.constant 1 : index
    %c0_6 = arith.constant 0 : index
    %c0_7 = arith.constant 0 : index
    %5 = vector.load %arg5[%c1, %c0_6, %c0_7] : memref<6x6x32xbf16, #tpu.memory_space<vmem>>, vector<4x1x32xbf16>
    tpu.vector_store %arg5[%c1, %c0_6, %c0_7], %4 {strides = array<i32>} : memref<6x6x32xbf16, #tpu.memory_space<vmem>>, vector<4x1x32xbf16>,
    %cst_8 = arith.constant 0.000000e+00 : bf16
    %6 = vector.broadcast %cst_8 : bf16 to vector<4x1x32xbf16>
    %c1_9 = arith.constant 1 : index
    %c5_10 = arith.constant 5 : index
    %c0_11 = arith.constant 0 : index
    %7 = vector.load %arg5[%c1_9, %c5_10, %c0_11] : memref<6x6x32xbf16, #tpu.memory_space<vmem>>, vector<4x1x32xbf16>
    tpu.vector_store %arg5[%c1_9, %c5_10, %c0_11], %6 {strides = array<i32>} : memref<6x6x32xbf16, #tpu.memory_space<vmem>>, vector<4x1x32xbf16>,
    %c0_12 = arith.constant 0 : index
    %c0_13 = arith.constant 0 : index
    %c0_14 = arith.constant 0 : index
    %c0_15 = arith.constant 0 : index
    %8 = vector.load %arg1[%c0_12, %c0_13, %c0_14, %c0_15] : memref<1x4x4x32xbf16, #tpu.memory_space<vmem>>, vector<1x4x4x32xbf16>
    %9 = vector.shape_cast %8 : vector<1x4x4x32xbf16> to vector<4x4x32xbf16>
    %c1_16 = arith.constant 1 : index
    %c1_17 = arith.constant 1 : index
    %c0_18 = arith.constant 0 : index
    %10 = vector.load %arg5[%c1_16, %c1_17, %c0_18] : memref<6x6x32xbf16, #tpu.memory_space<vmem>>, vector<4x4x32xbf16>
    tpu.vector_store %arg5[%c1_16, %c1_17, %c0_18], %9 {strides = array<i32>} : memref<6x6x32xbf16, #tpu.memory_space<vmem>>, vector<4x4x32xbf16>,
    %cst_19 = arith.constant 0.000000e+00 : f32
    %11 = vector.broadcast %cst_19 : f32 to vector<16x8xf32>
    %c0_20 = arith.constant 0 : index
    %c0_21 = arith.constant 0 : index
    %c0_22 = arith.constant 0 : index
    %12 = vector.load %arg5[%c0_20, %c0_21, %c0_22] : memref<6x6x32xbf16, #tpu.memory_space<vmem>>, vector<4x4x32xbf16>
    %13 = vector.shape_cast %12 : vector<4x4x32xbf16> to vector<16x32xbf16>
    %c0_23 = arith.constant 0 : index
    %c0_24 = arith.constant 0 : index
    %c0_25 = arith.constant 0 : index
    %14 = vector.load %arg2[%c0_23, %c0_24, %c0_25] : memref<9x32x8xbf16, #tpu.memory_space<vmem>>, vector<1x32x8xbf16>
    %15 = vector.shape_cast %14 : vector<1x32x8xbf16> to vector<32x8xbf16>
    %cst_26 = arith.constant dense<0.000000e+00> : vector<16x8xf32>
    %16 = tpu.matmul %13, %15, %cst_26 {dimension_numbers = #tpu.dot_dimension_numbers<[1], [0], [0], [1], [0, 0, 1, 1], [], []>} : vector<16x32xbf16>, vector<32x8xbf16>, vector<16x8xf32> -> vector<16x8xf32>
    %17 = arith.addf %11, %16 : vector<16x8xf32>
    %c0_27 = arith.constant 0 : index
    %c1_28 = arith.constant 1 : index
    %c0_29 = arith.constant 0 : index
    %18 = vector.load %arg5[%c0_27, %c1_28, %c0_29] : memref<6x6x32xbf16, #tpu.memory_space<vmem>>, vector<4x4x32xbf16>
    %19 = vector.shape_cast %18 : vector<4x4x32xbf16> to vector<16x32xbf16>
    %c1_30 = arith.constant 1 : index
    %c0_31 = arith.constant 0 : index
    %c0_32 = arith.constant 0 : index
    %20 = vector.load %arg2[%c1_30, %c0_31, %c0_32] : memref<9x32x8xbf16, #tpu.memory_space<vmem>>, vector<1x32x8xbf16>
    %21 = vector.shape_cast %20 : vector<1x32x8xbf16> to vector<32x8xbf16>
    %cst_33 = arith.constant dense<0.000000e+00> : vector<16x8xf32>
    %22 = tpu.matmul %19, %21, %cst_33 {dimension_numbers = #tpu.dot_dimension_numbers<[1], [0], [0], [1], [0, 0, 1, 1], [], []>} : vector<16x32xbf16>, vector<32x8xbf16>, vector<16x8xf32> -> vector<16x8xf32>
    %23 = arith.addf %17, %22 : vector<16x8xf32>
    %c0_34 = arith.constant 0 : index
    %c2 = arith.constant 2 : index
    %c0_35 = arith.constant 0 : index
    %24 = vector.load %arg5[%c0_34, %c2, %c0_35] : memref<6x6x32xbf16, #tpu.memory_space<vmem>>, vector<4x4x32xbf16>
    %25 = vector.shape_cast %24 : vector<4x4x32xbf16> to vector<16x32xbf16>
    %c2_36 = arith.constant 2 : index
    %c0_37 = arith.constant 0 : index
    %c0_38 = arith.constant 0 : index
    %26 = vector.load %arg2[%c2_36, %c0_37, %c0_38] : memref<9x32x8xbf16, #tpu.memory_space<vmem>>, vector<1x32x8xbf16>
    %27 = vector.shape_cast %26 : vector<1x32x8xbf16> to vector<32x8xbf16>
    %cst_39 = arith.constant dense<0.000000e+00> : vector<16x8xf32>
    %28 = tpu.matmul %25, %27, %cst_39 {dimension_numbers = #tpu.dot_dimension_numbers<[1], [0], [0], [1], [0, 0, 1, 1], [], []>} : vector<16x32xbf16>, vector<32x8xbf16>, vector<16x8xf32> -> vector<16x8xf32>
    %29 = arith.addf %23, %28 : vector<16x8xf32>
    %c1_40 = arith.constant 1 : index
    %c0_41 = arith.constant 0 : index
    %c0_42 = arith.constant 0 : index
    %30 = vector.load %arg5[%c1_40, %c0_41, %c0_42] : memref<6x6x32xbf16, #tpu.memory_space<vmem>>, vector<4x4x32xbf16>
    %31 = vector.shape_cast %30 : vector<4x4x32xbf16> to vector<16x32xbf16>
    %c3 = arith.constant 3 : index
    %c0_43 = arith.constant 0 : index
    %c0_44 = arith.constant 0 : index
    %32 = vector.load %arg2[%c3, %c0_43, %c0_44] : memref<9x32x8xbf16, #tpu.memory_space<vmem>>, vector<1x32x8xbf16>
    %33 = vector.shape_cast %32 : vector<1x32x8xbf16> to vector<32x8xbf16>
    %cst_45 = arith.constant dense<0.000000e+00> : vector<16x8xf32>
    %34 = tpu.matmul %31, %33, %cst_45 {dimension_numbers = #tpu.dot_dimension_numbers<[1], [0], [0], [1], [0, 0, 1, 1], [], []>} : vector<16x32xbf16>, vector<32x8xbf16>, vector<16x8xf32> -> vector<16x8xf32>
    %35 = arith.addf %29, %34 : vector<16x8xf32>
    %c1_46 = arith.constant 1 : index
    %c1_47 = arith.constant 1 : index
    %c0_48 = arith.constant 0 : index
    %36 = vector.load %arg5[%c1_46, %c1_47, %c0_48] : memref<6x6x32xbf16, #tpu.memory_space<vmem>>, vector<4x4x32xbf16>
    %37 = vector.shape_cast %36 : vector<4x4x32xbf16> to vector<16x32xbf16>
    %c4 = arith.constant 4 : index
    %c0_49 = arith.constant 0 : index
    %c0_50 = arith.constant 0 : index
    %38 = vector.load %arg2[%c4, %c0_49, %c0_50] : memref<9x32x8xbf16, #tpu.memory_space<vmem>>, vector<1x32x8xbf16>
    %39 = vector.shape_cast %38 : vector<1x32x8xbf16> to vector<32x8xbf16>
    %cst_51 = arith.constant dense<0.000000e+00> : vector<16x8xf32>
    %40 = tpu.matmul %37, %39, %cst_51 {dimension_numbers = #tpu.dot_dimension_numbers<[1], [0], [0], [1], [0, 0, 1, 1], [], []>} : vector<16x32xbf16>, vector<32x8xbf16>, vector<16x8xf32> -> vector<16x8xf32>
    %41 = arith.addf %35, %40 : vector<16x8xf32>
    %c1_52 = arith.constant 1 : index
    %c2_53 = arith.constant 2 : index
    %c0_54 = arith.constant 0 : index
    %42 = vector.load %arg5[%c1_52, %c2_53, %c0_54] : memref<6x6x32xbf16, #tpu.memory_space<vmem>>, vector<4x4x32xbf16>
    %43 = vector.shape_cast %42 : vector<4x4x32xbf16> to vector<16x32xbf16>
    %c5_55 = arith.constant 5 : index
    %c0_56 = arith.constant 0 : index
    %c0_57 = arith.constant 0 : index
    %44 = vector.load %arg2[%c5_55, %c0_56, %c0_57] : memref<9x32x8xbf16, #tpu.memory_space<vmem>>, vector<1x32x8xbf16>
    %45 = vector.shape_cast %44 : vector<1x32x8xbf16> to vector<32x8xbf16>
    %cst_58 = arith.constant dense<0.000000e+00> : vector<16x8xf32>
    %46 = tpu.matmul %43, %45, %cst_58 {dimension_numbers = #tpu.dot_dimension_numbers<[1], [0], [0], [1], [0, 0, 1, 1], [], []>} : vector<16x32xbf16>, vector<32x8xbf16>, vector<16x8xf32> -> vector<16x8xf32>
    %47 = arith.addf %41, %46 : vector<16x8xf32>
    %c2_59 = arith.constant 2 : index
    %c0_60 = arith.constant 0 : index
    %c0_61 = arith.constant 0 : index
    %48 = vector.load %arg5[%c2_59, %c0_60, %c0_61] : memref<6x6x32xbf16, #tpu.memory_space<vmem>>, vector<4x4x32xbf16>
    %49 = vector.shape_cast %48 : vector<4x4x32xbf16> to vector<16x32xbf16>
    %c6 = arith.constant 6 : index
    %c0_62 = arith.constant 0 : index
    %c0_63 = arith.constant 0 : index
    %50 = vector.load %arg2[%c6, %c0_62, %c0_63] : memref<9x32x8xbf16, #tpu.memory_space<vmem>>, vector<1x32x8xbf16>
    %51 = vector.shape_cast %50 : vector<1x32x8xbf16> to vector<32x8xbf16>
    %cst_64 = arith.constant dense<0.000000e+00> : vector<16x8xf32>
    %52 = tpu.matmul %49, %51, %cst_64 {dimension_numbers = #tpu.dot_dimension_numbers<[1], [0], [0], [1], [0, 0, 1, 1], [], []>} : vector<16x32xbf16>, vector<32x8xbf16>, vector<16x8xf32> -> vector<16x8xf32>
    %53 = arith.addf %47, %52 : vector<16x8xf32>
    %c2_65 = arith.constant 2 : index
    %c1_66 = arith.constant 1 : index
    %c0_67 = arith.constant 0 : index
    %54 = vector.load %arg5[%c2_65, %c1_66, %c0_67] : memref<6x6x32xbf16, #tpu.memory_space<vmem>>, vector<4x4x32xbf16>
    %55 = vector.shape_cast %54 : vector<4x4x32xbf16> to vector<16x32xbf16>
    %c7 = arith.constant 7 : index
    %c0_68 = arith.constant 0 : index
    %c0_69 = arith.constant 0 : index
    %56 = vector.load %arg2[%c7, %c0_68, %c0_69] : memref<9x32x8xbf16, #tpu.memory_space<vmem>>, vector<1x32x8xbf16>
    %57 = vector.shape_cast %56 : vector<1x32x8xbf16> to vector<32x8xbf16>
    %cst_70 = arith.constant dense<0.000000e+00> : vector<16x8xf32>
    %58 = tpu.matmul %55, %57, %cst_70 {dimension_numbers = #tpu.dot_dimension_numbers<[1], [0], [0], [1], [0, 0, 1, 1], [], []>} : vector<16x32xbf16>, vector<32x8xbf16>, vector<16x8xf32> -> vector<16x8xf32>
    %59 = arith.addf %53, %58 : vector<16x8xf32>
    %c2_71 = arith.constant 2 : index
    %c2_72 = arith.constant 2 : index
    %c0_73 = arith.constant 0 : index
    %60 = vector.load %arg5[%c2_71, %c2_72, %c0_73] : memref<6x6x32xbf16, #tpu.memory_space<vmem>>, vector<4x4x32xbf16>
    %61 = vector.shape_cast %60 : vector<4x4x32xbf16> to vector<16x32xbf16>
    %c8 = arith.constant 8 : index
    %c0_74 = arith.constant 0 : index
    %c0_75 = arith.constant 0 : index
    %62 = vector.load %arg2[%c8, %c0_74, %c0_75] : memref<9x32x8xbf16, #tpu.memory_space<vmem>>, vector<1x32x8xbf16>
    %63 = vector.shape_cast %62 : vector<1x32x8xbf16> to vector<32x8xbf16>
    %cst_76 = arith.constant dense<0.000000e+00> : vector<16x8xf32>
    %64 = tpu.matmul %61, %63, %cst_76 {dimension_numbers = #tpu.dot_dimension_numbers<[1], [0], [0], [1], [0, 0, 1, 1], [], []>} : vector<16x32xbf16>, vector<32x8xbf16>, vector<16x8xf32> -> vector<16x8xf32>
    %65 = arith.addf %59, %64 : vector<16x8xf32>
    %c0_77 = arith.constant 0 : index
    %c0_78 = arith.constant 0 : index
    %66 = vector.load %arg3[%c0_77, %c0_78] : memref<1x8xf32, #tpu.memory_space<vmem>>, vector<1x8xf32>
    %67 = vector.broadcast %66 : vector<1x8xf32> to vector<16x8xf32>
    %68 = arith.addf %65, %67 : vector<16x8xf32>
    %cst_79 = arith.constant 0.000000e+00 : f32
    %69 = vector.broadcast %cst_79 : f32 to vector<16x8xf32>
    %70 = arith.maximumf %68, %69 : vector<16x8xf32>
    %71 = arith.truncf %70 : vector<16x8xf32> to vector<16x8xbf16>
    %c0_80 = arith.constant 0 : index
    %c0_81 = arith.constant 0 : index
    %c0_82 = arith.constant 0 : index
    %72 = vector.load %arg4[%c0_80, %c0_81, %c0_82] : memref<1x16x8xbf16, #tpu.memory_space<vmem>>, vector<1x16x8xbf16>
    %73 = vector.shape_cast %72 : vector<1x16x8xbf16> to vector<16x8xbf16>
    %74 = vector.shape_cast %71 : vector<16x8xbf16> to vector<1x16x8xbf16>
    tpu.vector_store %arg4[%c0_80, %c0_81, %c0_82], %74 {strides = array<i32>} : memref<1x16x8xbf16, #tpu.memory_space<vmem>>, vector<1x16x8xbf16>,
    return
  }
  func.func @transform_0(%arg0: i32) -> (i32, i32, i32, i32) {
    %c0_i32 = arith.constant 0 : i32
    %c0_i32_0 = arith.constant 0 : i32
    %c0_i32_1 = arith.constant 0 : i32
    %c0_i32_2 = arith.constant 0 : i32
    return %arg0, %c0_i32, %c0_i32_0, %c0_i32_1 : i32, i32, i32, i32
  }
  func.func @transform_1(%arg0: i32) -> (i32, i32, i32) {
    %c0_i32 = arith.constant 0 : i32
    %c0_i32_0 = arith.constant 0 : i32
    %c0_i32_1 = arith.constant 0 : i32
    %c0_i32_2 = arith.constant 0 : i32
    return %c0_i32, %c0_i32_0, %c0_i32_1 : i32, i32, i32
  }
  func.func @transform_2(%arg0: i32) -> (i32, i32) {
    %c0_i32 = arith.constant 0 : i32
    %c0_i32_0 = arith.constant 0 : i32
    %c0_i32_1 = arith.constant 0 : i32
    return %c0_i32, %c0_i32_0 : i32, i32
  }
  func.func @transform_3(%arg0: i32) -> (i32, i32, i32) {
    %c0_i32 = arith.constant 0 : i32
    %c0_i32_0 = arith.constant 0 : i32
    %c0_i32_1 = arith.constant 0 : i32
    return %arg0, %c0_i32, %c0_i32_0 : i32, i32, i32
  }
}

</mosaic_0001>

<bundles_post_ra>
// kernel: tpu_custom_call.1
= control target key start
LH: loop header
LB: loop body
LE: loop exit
PB: predicated region body
PF: predicated region fallthrough
CT: control target
= control target key end

     0   :  { %s1868_s12 = smov 0   ;;  %s2141_s0 = inlined_call_operand.vmem [shape: bf16[2,4,4,32], index: 0, kind: input, shape index: {}]   ;;  %s2142_s1 = inlined_call_operand.vmem [shape: bf16[9,32,8], index: 1, kind: input, shape index: {}]   ;;  %s2143_s2 = inlined_call_operand.vmem [shape: f32[1,8], index: 2, kind: input, shape index: {}]   ;;  %s2144_s3 = inlined_call_operand.vmem [shape: bf16[2,16,8], index: 3, kind: output, shape index: {}]  }
   0x1 LB: > { %s1578_s13 = sadd.s32 4294967295, %s1842_s12   ;;  %p1582_p0 = scmp.ge.s32.totalorder %s1842_s12, 1  ;;  %s1842_s12 = sphi %s1868_s12, %s13_s12  }
   0x2   : > { %p137_p1 = scmp.lt.s32.totalorder %s1842_s12, 3 }
   0x4   : > { %p138_p2 = pnand %p1582_p0, %p137_p1 }
   0x5   : > { %v1806_v0 = vld [vmem:[%s2142_s1 + $0x10] sm:$0xff] (!%p138_p2)   ;;  %v1844_v1 = vmov (!%p138_p2), 0.0   ;;  %v1807_v2 = vld [vmem:[%s2142_s1] sm:$0xff] (!%p138_p2)   ;;  %v1808_v3 = vld [vmem:[%s2142_s1 + $0x18] sm:$0xff] (!%p138_p2)   ;;  %vm1845_vm0 = vmmov (!%p138_p2), 0   ;;  %p161_p3 = scmp.lt.s32.totalorder (!%p138_p2), %s1578_s13, 1  ;;  %v411_v43 = vlaneseq (!%p138_p2) }
   0x6   : > { %141 = sbr.rel (%p138_p2) target bundleno = 311 (0x137), region = 32  ;;  %1722 = vmatprep.subr.bf16.mxu0 (!%p138_p2), %v1844_v1  ;;  %1730 = vmatprep.subr.bf16.mxu1 (!%p138_p2), %v1844_v1  ;;  %v1809_v4 = vld [vmem:[%s2142_s1 + $0x8] sm:$0xff] (!%p138_p2)   ;;  %vm172_vm1 = vcmask (!%p138_p2), 256000   ;;  %vm177_vm2 = vcmask (!%p138_p2), 253952   ;;  %vm178_vm3 = vsmask.f32 (!%p138_p2), 256 }
   0x7   : > { %1723 = vmatpush3.bf16.msra.mxu0 (!%p138_p2), %v1806_v0  ;;  %1726 = vmatprep.mubr.msk.bf16.mxu0 (!%p138_p2), %vm1845_vm0, %v1844_v1  ;;  %vm192_vm4 = vcmask (!%p138_p2), 256002   ;;  %v1846_v5 = vmov (!%p138_p2), 0   ;;  %vm1899_vm5 = vmand (!%p138_p2), %vm177_vm2, %vm178_vm3  ;;  %v180_v7 = vld [vmem:[#allocation2 + $0x4] sm:$0x1] (!%p138_p2)  ;;  %v183_v8 = vld [vmem:[#allocation2 + $0x8] sm:$0x1] (!%p138_p2) }
   0x8   : > { %1731 = vmatpush3.bf16.msra.mxu1 (!%p138_p2), %v1807_v2  ;;  %1724 = vmatprep.subr.bf16.mxu0 (!%p138_p2), %v1844_v1  ;;  %173 = vst.msk [vmem:[#allocation2] sm:$0x7] (!%p138_p2), %vm172_vm1, %v1846_v5  ;;  %vm193_vm6 = vsmask.f32 (!%p138_p2), 7946  ;;  %175 = vst.msk [vmem:[#allocation2 + $0x14] sm:$0x7] (!%p138_p2), %vm172_vm1, %v1846_v5 }
   0x9   : > { %1732 = vmatprep.subr.bf16.mxu1 (!%p138_p2), %v1844_v1  ;;  %1734 = vmatprep.mubr.msk.bf16.mxu1 (!%p138_p2), %vm1845_vm0, %v1844_v1  ;;  %v181_v9 = vsel (!%p138_p2), %vm1899_vm5, 0, %v180_v7  ;;  %v184_v10 = vsel (!%p138_p2), %vm1899_vm5, 0, %v183_v8  ;;  %v186_v11 = vld [vmem:[#allocation2 + $0xc] sm:$0x1] (!%p138_p2)  ;;  %vm1909_vm7 = vmand (!%p138_p2), %vm192_vm4, %vm193_vm6  ;;  %v195_v14 = vld [vmem:[#allocation2 + $0x4] sm:$0x4] (!%p138_p2) }
   0xa   : > { %182 = vst [vmem:[#allocation2 + $0x4] sm:$0x1] (!%p138_p2), %v181_v9  ;;  %185 = vst [vmem:[#allocation2 + $0x8] sm:$0x1] (!%p138_p2), %v184_v10  ;;  %v187_v13 = vsel (!%p138_p2), %vm1899_vm5, 0, %v186_v11  ;;  %v196_v16 = vsel (!%p138_p2), %vm1909_vm7, 0, %v195_v14 }
   0xb   : > { %1725 = vmatpush3.bf16.msra.mxu0 (!%p138_p2), %v1808_v3  ;;  %v198_v15 = vld [vmem:[#allocation2 + $0x8] sm:$0x4] (!%p138_p2)  ;;  %188 = vst [vmem:[#allocation2 + $0xc] sm:$0x1] (!%p138_p2), %v187_v13  ;;  %v201_v18 = vld [vmem:[#allocation2 + $0xc] sm:$0x4] (!%p138_p2) }
   0xc   : > { %1733 = vmatpush3.bf16.msra.mxu1 (!%p138_p2), %v1809_v4  ;;  %1738 = vmatprep.subr.bf16.mxu0 (!%p138_p2), %v1844_v1  ;;  %v199_v17 = vsel (!%p138_p2), %vm1909_vm7, 0, %v198_v15  ;;  %vm276_vm8 = vsmask.f32 (!%p138_p2), 2306  ;;  %197 = vst [vmem:[#allocation2 + $0x4] sm:$0x4] (!%p138_p2), %v196_v16  ;;  %v202_v19 = vsel (!%p138_p2), %vm1909_vm7, 0, %v201_v18 }
   0xd   : > { %s2160_s13 = smov (!%p161_p3, %s1578_s13), 1  ;;  %1746 = vmatprep.subr.bf16.mxu1 %v1844_v1  ;;  %200 = vst [vmem:[#allocation2 + $0x8] sm:$0x4] %v199_v17  ;;  %203 = vst [vmem:[#allocation2 + $0xc] sm:$0x4] %v202_v19  ;;  %v412_v54 = vshrl.u32 %v411_v43, 7 }
   0xe   : > { %s1691_s22 = sshll.u32 %s2160_s13, 3  ;;  %vm1935_vm9 = vmand %vm172_vm1, %vm276_vm8  ;;  %vm338_vm10 = vsmask.f32 1280  ;;  %vm339_vm11 = vsmask.f32 3336  ;;  %vm597_vm15 = vcmask 1040384  }
   0xf   : > { %s1919_s25 = scalar_lea.vmem %s2141_s0, %s1691_s22  ;;  %v1591_v31 = vld.sshfl [vmem:[#allocation2] sm:$0x13 pattern:$0x76325410]  ;;  %vm341_vm12 = vsmask.f32 5392  ;;  %vm340_vm14 = vmor %vm338_vm10, %vm339_vm11  ;;  %s170_s7 = scalar_lea.vmem %s2144_s3, %s1691_s22 }
  0x10   : > { %v1587_v20 = vld.sshfl [vmem:[%s1919_s25] sm:$0x3 pattern:$0x76325410]  ;;  %v313_v35 = vcombine.high %v1591_v31, %v1591_v31  ;;  %v346_v37 = vshrl.u32 %v1591_v31, 16  ;;  %v349_v41 = vshll.u32 %v1591_v31, 16  ;;  %vm1950_vm3 = vmor %vm340_vm14, %vm341_vm12 }
  0x11   : > { %v1588_v21 = vld.sshfl [vmem:[%s1919_s25 + $0x2] sm:$0x3 pattern:$0x76325410]  ;;  %v244_v22 = vshrl.u32 %v1587_v20, 16  ;;  %v247_v23 = vshll.u32 %v1587_v20, 16 }
  0x12   : > { %v1589_v24 = vld.sshfl [vmem:[%s1919_s25 + $0x4] sm:$0x3 pattern:$0x76325410]  ;;  %v251_v25 = vshrl.u32 %v1588_v21, 16  ;;  %v254_v26 = vshll.u32 %v1588_v21, 16 }
  0x13   : > { %v246_v27 = vrot.slane %v244_v22, 7  ;;  %v258_v28 = vshrl.u32 %v1589_v24, 16  ;;  %v261_v29 = vshll.u32 %v1589_v24, 16  ;;  %v278_v39 = vld [vmem:[#allocation2 + $0x4] sm:$0x7]  ;;  %v355_v42 = vshll.u32 %v313_v35, 16 }
  0x14   : > { %v253_v30 = vrot.slane %v251_v25, 7  ;;  %v281_v40 = vld [vmem:[#allocation2 + $0x8] sm:$0x7]  ;;  %vm343_vm13 = vsmask.f32 7448  ;;  %v348_v47 = vrot.slane %v346_v37, 6 }
  0x15   : > { %v249_v32 = vor.u32 %v247_v23, %v246_v27  ;;  %v260_v33 = vrot.slane %v258_v28, 7  ;;  %v284_v46 = vld [vmem:[#allocation2 + $0xc] sm:$0x7]  ;;  %v351_v49 = vrot.slane %v349_v41, 7  ;;  %v1847_v50 = vmov 1983009808   ;;  %vm1964_vm8 = vmor %vm1950_vm3, %vm343_vm13 }
  0x16   : > { %v256_v36 = vor.u32 %v254_v26, %v253_v30  ;;  %v409_v51 = vunpack.c.l.s4 %v1847_v50  ;;  %v357_v53 = vrot.slane %v355_v42, 7  ;;  %v1947_v55 = vld.sshfl [vmem:[#allocation2] sm:$0x12 pattern:$0x76325410]  ;;  %vm598_vm1 = vcmask 1042434  }
  0x17   : > { %v263_v38 = vor.u32 %v261_v29, %v260_v33  ;;  %v279_v44 = vsel %vm1935_vm9, %v249_v32, %v278_v39  ;;  %v352_v52 = vor.u32 %v351_v49, %v348_v47  ;;  %vm600_vm2 = vcmask 1044484   ;;  %v189_v58 = vld [vmem:[#allocation2 + $0x10] sm:$0x1]  ;;  %v204_v59 = vld [vmem:[#allocation2 + $0x10] sm:$0x4]  ;;  %v1815_v60 = vld [vmem:[%s2142_s1 + $0x38] sm:$0xff]  }
  0x18   : > { %v282_v45 = vsel %vm1935_vm9, %v256_v36, %v281_v40  ;;  %280 = vst [vmem:[#allocation2 + $0x4] sm:$0x7] %v279_v44  ;;  %v410_v56 = vunpack.c.0.s8 %v409_v51  ;;  %vm602_vm4 = vcmask 1046534   ;;  %v1609_v61 = vrot.slane %v1947_v55, 9  ;;  %v1813_v41 = vld [vmem:[%s2142_s1 + $0x30] sm:$0xff]   ;;  %v1829_v44 = vld [vmem:[%s2142_s1 + $0x88] sm:$0xff]  }
  0x19   : > { %283 = vst [vmem:[#allocation2 + $0x8] sm:$0x7] %v282_v45  ;;  %v285_v48 = vsel %vm1935_vm9, %v263_v38, %v284_v46  ;;  %v353_v57 = vrot.slane %v352_v52, 2  ;;  %v190_v62 = vsel %vm1899_vm5, 0, %v189_v58  ;;  %v205_v63 = vsel %vm1909_vm7, 0, %v204_v59  ;;  %vm1972_vm5 = vmor %vm597_vm15, %vm598_vm1 }
  0x1a   : > { %286 = vst [vmem:[#allocation2 + $0xc] sm:$0x7] %v285_v48  ;;  %191 = vst [vmem:[#allocation2 + $0x10] sm:$0x1] %v190_v62  ;;  %v1959_v7 = vsub.s32 %v410_v56, %v412_v54  ;;  %vm435_vm6 = vcmask 261120   ;;  %v572_v12 = vcombine.high %v1947_v55, %v1947_v55 }
  0x1b   : > { %206 = vst [vmem:[#allocation2 + $0x10] sm:$0x4] %v205_v63  ;;  %v358_v27 = vsel %vm1964_vm8, %v353_v57, %v357_v53  ;;  %vm601_vm7 = vmor %vm1972_vm5, %vm600_vm2  ;;  %v1590_v58 = vld.sshfl [vmem:[%s1919_s25 + $0x6] sm:$0x3 pattern:$0x76325410] }
  0x1c   : > { %v606_v35 = vrot.slane %v572_v12, 7  ;;  %vm1989_vm10 = vmor %vm601_vm7, %vm602_vm4 }
  0x1e   : > { %v607_v55 = vsel %vm1989_vm10, %v1609_v61, %v606_v35  ;;  %v265_v61 = vshrl.u32 %v1590_v58, 16 }
  0x1f   : > { %v1592_v0 = vld.sshfl [vmem:[#allocation2 + $0x4] sm:$0x13 pattern:$0x76325410] }
  0x20   : > { %v1593_v2 = vld.sshfl [vmem:[#allocation2 + $0x8] sm:$0x13 pattern:$0x76325410]  ;;  %v321_v3 = vcombine.high %v1592_v0, %v1592_v0  ;;  %v360_v4 = vshrl.u32 %v1592_v0, 16  ;;  %v363_v5 = vshll.u32 %v1592_v0, 16 }
  0x21   : > { %v1594_v8 = vld.sshfl [vmem:[#allocation2 + $0xc] sm:$0x13 pattern:$0x76325410]  ;;  %v329_v9 = vcombine.high %v1593_v2, %v1593_v2  ;;  %v374_v10 = vshrl.u32 %v1593_v2, 16  ;;  %v377_v11 = vshll.u32 %v1593_v2, 16 }
  0x22   : > { %v337_v13 = vcombine.high %v1594_v8, %v1594_v8  ;;  %v362_v14 = vrot.slane %v360_v4, 6  ;;  %v365_v15 = vrot.slane %v363_v5, 7  ;;  %v369_v16 = vshll.u32 %v321_v3, 16  ;;  %v287_v5 = vld [vmem:[#allocation2 + $0x10] sm:$0x7] }
  0x23   : > { %v376_v18 = vrot.slane %v374_v10, 6  ;;  %v379_v19 = vrot.slane %v377_v11, 7  ;;  %v383_v20 = vshll.u32 %v329_v9, 16  ;;  %v388_v21 = vshrl.u32 %v1594_v8, 16 }
  0x24   : > { %v366_v22 = vor.u32 %v365_v15, %v362_v14  ;;  %v371_v23 = vrot.slane %v369_v16, 7  ;;  %v391_v24 = vshll.u32 %v1594_v8, 16  ;;  %v397_v25 = vshll.u32 %v337_v13, 16  ;;  %v1812_v8 = vld [vmem:[%s2142_s1 + $0x20] sm:$0xff]   ;;  %v1814_v16 = vld [vmem:[%s2142_s1 + $0x28] sm:$0xff]  }
  0x25   : > { %v1830_v26 = vld.sshfl [vmem:[#allocation2] sm:$0xf pattern:$0x76325410]  ;;  %v380_v28 = vor.u32 %v379_v19, %v376_v18  ;;  %v385_v29 = vrot.slane %v383_v20, 7  ;;  %v390_v30 = vrot.slane %v388_v21, 6 }
  0x26   : > { %v1831_v31 = vld.sshfl [vmem:[#allocation2 + $0x8] sm:$0xf pattern:$0x76325410]  ;;  %v367_v32 = vrot.slane %v366_v22, 2  ;;  %v393_v33 = vrot.slane %v391_v24, 7 }
  0x27   : > { %v381_v36 = vrot.slane %v380_v28, 2  ;;  %v399_v37 = vrot.slane %v397_v25, 7  ;;  %v1606_v38 = vld.sshfl [vmem:[#allocation2 + $0x4] sm:$0x12 pattern:$0x76325410]  ;;  %v500_v48 = vcombine.low %v1830_v26, %v1831_v31 }
  0x28   : > { %v1983_v39 = vsel %vm1964_vm8, %v367_v32, %v371_v23  ;;  %v394_v40 = vor.u32 %v393_v33, %v390_v30  ;;  %v1607_v42 = vld.sshfl [vmem:[#allocation2 + $0x8] sm:$0x12 pattern:$0x76325410]  ;;  %v580_v43 = vcombine.high %v1606_v38, %v1606_v38  ;;  %v1610_v45 = vrot.slane %v1606_v38, 9 }
  0x29   : > { %v1995_v46 = vsel %vm1964_vm8, %v381_v36, %v385_v29  ;;  %v406_v47 = vcombine.low %v358_v27, %v1983_v39  ;;  %v1608_v49 = vld.sshfl [vmem:[#allocation2 + $0xc] sm:$0x12 pattern:$0x76325410]  ;;  %v588_v50 = vcombine.high %v1607_v42, %v1607_v42  ;;  %v1611_v54 = vrot.slane %v1607_v42, 9  ;;  %1735 = vmatmul.mubr.msk.bf16.vlgmr.msra.gmra.mrb[0].mxu1 %vm435_vm6, %v500_v48  ;;  %v1816_v27 = vld [vmem:[%s2142_s1 + $0x40] sm:$0xff]  }
  0x2a   : > { %v395_v51 = vrot.slane %v394_v40, 2  ;;  %v596_v52 = vcombine.high %v1608_v49, %v1608_v49  ;;  %v610_v53 = vrot.slane %v580_v43, 7  ;;  %v1612_v57 = vrot.slane %v1608_v49, 9  ;;  %1747 = vmatpush3.bf16.msra.mxu1 %v1813_v41  ;;  %1750 = vmatprep.mubr.msk.bf16.mxu1 %vm1845_vm0, %v1844_v1  ;;  %v1820_v31 = vld [vmem:[%s2142_s1 + $0x48] sm:$0xff]   ;;  %v1819_v40 = vld [vmem:[%s2142_s1 + $0x50] sm:$0xff]  }
  0x2b   : > { %v614_v56 = vrot.slane %v588_v50, 7  ;;  %v414_v2 = vrot.slane %v406_v47, %v1959_v7  ;;  %1748 = vmatprep.subr.bf16.mxu1 %v1844_v1  ;;  %v268_v4 = vshll.u32 %v1590_v58, 16  ;;  %v267_v10 = vrot.slane %v265_v61, 7 }
  0x2c   : > { %v2004_v59 = vsel %vm1964_vm8, %v395_v51, %v399_v37  ;;  %v2011_v62 = vsel %vm1989_vm10, %v1610_v45, %v610_v53  ;;  %v618_v63 = vrot.slane %v596_v52, 7  ;;  %v1663_v20 = vld.sshfl [vmem:[#allocation2 + $0x14] sm:$0x13 pattern:$0x76325410] }
  0x2d   : > { %v407_v0 = vcombine.low %v1995_v46, %v2004_v59  ;;  %v2021_v3 = vsel %vm1989_vm10, %v1611_v54, %v614_v56  ;;  %v625_v12 = vcombine.low %v607_v55, %v2011_v62  ;;  %v270_v14 = vor.u32 %v268_v4, %v267_v10  ;;  %v1832_v34 = vld.sshfl [vmem:[#allocation2 + $0x4] sm:$0xf pattern:$0x76325410]  ;;  %v1821_v54 = vld [vmem:[%s2142_s1 + $0x58] sm:$0xff]  }
  0x2e   : > { %v2028_v9 = vsel %vm1989_vm10, %v1612_v57, %v618_v63  ;;  %1749 = vmatpush3.bf16.msra.mxu1 %v1815_v60  ;;  %v1228_v21 = vcombine.high %v1663_v20, %v1663_v20  ;;  %v1272_v22 = vshrl.u32 %v1663_v20, 16  ;;  %v1275_v23 = vshll.u32 %v1663_v20, 16  ;;  %v1674_v57 = vld.sshfl [vmem:[#allocation2 + $0x14] sm:$0x12 pattern:$0x76325410] }
  0x2f   : > { %v2031_v11 = vrot.slane %v407_v0, %v1959_v7  ;;  %v626_v13 = vcombine.low %v2021_v3, %v2028_v9  ;;  %1762 = vmatprep.subr.bf16.mxu1 %v1844_v1  ;;  %v288_v17 = vsel %vm1935_vm9, %v270_v14, %v287_v5  ;;  %v633_v18 = vrot.slane %v625_v12, %v1959_v7  ;;  %v1834_v6 = vld.sshfl [vmem:[#allocation2 + $0x8] sm:$0xf pattern:$0x76325410]  ;;  %v1822_v10 = vld [vmem:[%s2142_s1 + $0x60] sm:$0xff]  }
  0x30   : > { %289 = vst [vmem:[#allocation2 + $0x10] sm:$0x7] %v288_v17  ;;  %v1274_v25 = vrot.slane %v1272_v22, 6  ;;  %v1277_v26 = vrot.slane %v1275_v23, 7  ;;  %v1281_v29 = vshll.u32 %v1228_v21, 16  ;;  %v1025_v33 = vcombine.low %v2011_v62, %v2021_v3  ;;  %v1823_v3 = vld [vmem:[%s2142_s1 + $0x70] sm:$0xff]  }
  0x31   : > { %v422_v15 = vcombine.low %v414_v2, %v2031_v11  ;;  %v2046_v19 = vrot.slane %v626_v13, %v1959_v7  ;;  %v889_v55 = vcombine.low %v1983_v39, %v1995_v46  ;;  %v1404_v61 = vcombine.high %v1674_v57, %v1674_v57  ;;  %v1828_v22 = vld [vmem:[%s2142_s1 + $0x80] sm:$0xff]  }
  0x32   : > { %v1278_v28 = vor.u32 %v1277_v26, %v1274_v25  ;;  %v1283_v45 = vrot.slane %v1281_v29, 7  ;;  %v1033_v62 = vrot.slane %v1025_v33, %v1959_v7  ;;  %v1678_v12 = vrot.slane %v1674_v57, 9 }
  0x33   : > { %1727 = vmatmul.mubr.msk.bf16.vlgmr.msra.gmra.mrb[0].mxu0 %vm435_vm6, %v422_v15  ;;  %v641_v24 = vcombine.low %v633_v18, %v2046_v19  ;;  %v897_v2 = vrot.slane %v889_v55, %v1959_v7  ;;  %v1419_v13 = vrot.slane %v1404_v61, 7  ;;  %v1825_v15 = vld [vmem:[%s2142_s1 + $0x78] sm:$0xff]  }
  0x34   : > { %1739 = vmatpush3.bf16.msra.mxu0 %v1812_v8  ;;  %1742 = vmatprep.mubr.msk.bf16.mxu0 %vm1845_vm0, %v1844_v1  ;;  %v1279_v43 = vrot.slane %v1278_v28, 2 }
  0x35   : > { %1740 = vmatprep.subr.bf16.mxu0 %v1844_v1  ;;  %v1420_v18 = vsel %vm1989_vm10, %v1678_v12, %v1419_v13 }
  0x36   : > { %v1284_v63 = vsel %vm1964_vm8, %v1279_v43, %v1283_v45 }
  0x37   : > { %v1833_v30 = vld.sshfl [vmem:[#allocation2 + $0xc] sm:$0xf pattern:$0x76325410] }
  0x38   : > { %1741 = vmatpush3.bf16.msra.mxu0 %v1814_v16  ;;  %v1630_v32 = vld.sshfl [vmem:[#allocation2 + $0x10] sm:$0x13 pattern:$0x76325410]  ;;  %v729_v47 = vcombine.low %v1832_v34, %v1833_v30  ;;  %v1824_v16 = vld [vmem:[%s2142_s1 + $0x68] sm:$0xff]  }
  0x39   : > { %1754 = vmatprep.subr.bf16.mxu0 %v1844_v1  ;;  %v827_v35 = vcombine.high %v1630_v32, %v1630_v32  ;;  %v871_v36 = vshrl.u32 %v1630_v32, 16  ;;  %v874_v37 = vshll.u32 %v1630_v32, 16  ;;  %v1641_v38 = vld.sshfl [vmem:[#allocation2 + $0x10] sm:$0x12 pattern:$0x76325410] }
  0x3a   : > { %v1003_v41 = vcombine.high %v1641_v38, %v1641_v38  ;;  %v1645_v42 = vrot.slane %v1641_v38, 9  ;;  %1751 = vmatmul.mubr.msk.bf16.vlgmr.msra.gmra.mrb[4].mxu1 %vm435_vm6, %v729_v47 }
  0x3b   : > { %1743 = vmatmul.mubr.msk.bf16.vlgmr.msra.gmra.mrb[4].mxu0 %vm435_vm6, %v641_v24  ;;  %v873_v48 = vrot.slane %v871_v36, 6  ;;  %v876_v49 = vrot.slane %v874_v37, 7  ;;  %v880_v50 = vshll.u32 %v827_v35, 16  ;;  %1763 = vmatpush3.bf16.msra.mxu1 %v1819_v40 }
  0x3c   : > { %1755 = vmatpush3.bf16.msra.mxu0 %v1816_v27  ;;  %1758 = vmatprep.mubr.msk.bf16.mxu0 %vm1845_vm0, %v1844_v1  ;;  %v1018_v51 = vrot.slane %v1003_v41, 7 }
  0x3d   : > { %1756 = vmatprep.subr.bf16.mxu0 %v1844_v1  ;;  %v877_v52 = vor.u32 %v876_v49, %v873_v48  ;;  %v882_v53 = vrot.slane %v880_v50, 7  ;;  %1764 = vmatprep.subr.bf16.mxu1 %v1844_v1 }
  0x3e   : > { %v1019_v56 = vsel %vm1989_vm10, %v1645_v42, %v1018_v51  ;;  %1766 = vmatprep.mubr.msk.bf16.mxu1 %vm1845_vm0, %v1844_v1 }
  0x3f   : > { %v878_v58 = vrot.slane %v877_v52, 2  ;;  %v1026_v60 = vcombine.low %v2028_v9, %v1019_v56  ;;  %1765 = vmatpush3.bf16.msra.mxu1 %v1821_v54  ;;  %v1835_v9 = vld.sshfl [vmem:[#allocation2 + $0x10] sm:$0xf pattern:$0x76325410]  ;;  %v1427_v21 = vcombine.low %v1019_v56, %v1420_v18 }
  0x40   : > { %1757 = vmatpush3.bf16.msra.mxu0 %v1820_v31  ;;  %1778 = vmatprep.subr.bf16.mxu1 %v1844_v1  ;;  %v1130_v20 = vcombine.low %v1834_v6, %v1835_v9  ;;  %v1686_v6 = vld [vmem:[%s2143_s2] ss:$0 sm:$0xff] }
  0x41   : > { %1770 = vmatprep.subr.bf16.mxu0 %v1844_v1  ;;  %v883_v39 = vsel %vm1964_vm8, %v878_v58, %v882_v53  ;;  %v1040_v46 = vrot.slane %v1026_v60, %v1959_v7 }
  0x42   : > { %v890_v0 = vcombine.low %v2004_v59, %v883_v39  ;;  %v1291_v4 = vcombine.low %v883_v39, %v1284_v63 }
  0x43   : > { %v1041_v5 = vcombine.low %v1033_v62, %v1040_v46 }
  0x44   : > { %v904_v8 = vrot.slane %v890_v0, %v1959_v7  ;;  %v1305_v59 = vrot.slane %v1291_v4, %v1959_v7 }
  0x45   : > { %1767 = vmatmul.mubr.msk.bf16.vlgmr.msra.gmra.mrb[8].mxu1 %vm435_vm6, %v1041_v5 }
  0x46   : > { %v905_v14 = vcombine.low %v897_v2, %v904_v8  ;;  %1779 = vmatpush3.bf16.msra.mxu1 %v1823_v3  ;;  %1782 = vmatprep.mubr.msk.bf16.mxu1 %vm1845_vm0, %v1844_v1  ;;  %v1306_v17 = vcombine.low %v2031_v11, %v1305_v59  ;;  %v1441_v11 = vrot.slane %v1427_v21, %v1959_v7 }
  0x47   : > { %1780 = vmatprep.subr.bf16.mxu1 %v1844_v1 }
  0x48   : > { %1759 = vmatmul.mubr.msk.bf16.vlgmr.msra.gmra.mrb[8].mxu0 %vm435_vm6, %v905_v14  ;;  %v1442_v23 = vcombine.low %v2046_v19, %v1441_v11 }
  0x49   : > { %1771 = vmatpush3.bf16.msra.mxu0 %v1822_v10  ;;  %1774 = vmatprep.mubr.msk.bf16.mxu0 %vm1845_vm0, %v1844_v1 }
  0x4a   : > { %1772 = vmatprep.subr.bf16.mxu0 %v1844_v1  ;;  %1781 = vmatpush3.bf16.msra.mxu1 %v1825_v15 }
  0x4d   : > { %1773 = vmatpush3.bf16.msra.mxu0 %v1824_v16  ;;  %1783 = vmatmul.mubr.msk.bf16.vlgmr.msra.gmra.mrb[12].mxu1 %vm435_vm6, %v1306_v17 }
  0x4e   : > { %1786 = vmatprep.subr.bf16.mxu0 %v1844_v1 }
  0x50   : > { %1775 = vmatmul.mubr.msk.bf16.vlgmr.msra.gmra.mrb[12].mxu0 %vm435_vm6, %v1130_v20 }
  0x51   : > { %1787 = vmatpush3.bf16.msra.mxu0 %v1828_v22  ;;  %1790 = vmatprep.mubr.msk.bf16.mxu0 %vm1845_vm0, %v1844_v1  ;;  %vm1520_vm0 = vcmask 60416  }
  0x52   : > { %1788 = vmatprep.subr.bf16.mxu0 %v1844_v1 }
  0x55   : > { %1789 = vmatpush3.bf16.msra.mxu0 %v1829_v44 }
  0x58   : > { %1791 = vmatmul.mubr.msk.bf16.vlgmr.msra.gmra.mrb[16].mxu0 %vm435_vm6, %v1442_v23 }
  0xfc   : > { %v550_v34 = vpop.f32.mrb[0].mxu1 }
  0xfd   : > { %v1736_v24 = vpop.f32.mrb[1].mxu1 }
  0xfe   : > { %v553_v25 = vpop.f32.mrb[2].mxu1 }
  0xff   : > { %v1737_v26 = vpop.f32.mrb[3].mxu1 }
 0x106   : > { %v473_v7 = vpop.f32.mrb[0].mxu0 }
 0x107   : > { %v551_v27 = vadd.f32 %v550_v34, %v473_v7  ;;  %v1728_v28 = vpop.f32.mrb[1].mxu0 }
 0x108   : > { %v476_v29 = vpop.f32.mrb[2].mxu0 }
 0x109   : > { %v554_v30 = vadd.f32 %v553_v25, %v476_v29  ;;  %v1729_v31 = vpop.f32.mrb[3].mxu0 }
 0x10d   : > { %v779_v19 = vpop.f32.mrb[4].mxu1 }
 0x10e   : > { %v691_v32 = vpop.f32.mrb[4].mxu0  ;;  %v1752_v40 = vpop.f32.mrb[5].mxu1 }
 0x10f   : > { %v698_v33 = vadd.f32 %v691_v32, %v551_v27  ;;  %v1744_v35 = vpop.f32.mrb[5].mxu0  ;;  %v782_v41 = vpop.f32.mrb[6].mxu1 }
 0x110   : > { %v694_v36 = vpop.f32.mrb[6].mxu0  ;;  %v1753_v43 = vpop.f32.mrb[7].mxu1 }
 0x111   : > { %v699_v1 = vadd.f32 %v694_v36, %v554_v30  ;;  %v1745_v37 = vpop.f32.mrb[7].mxu0  ;;  %v786_v38 = vadd.f32 %v779_v19, %v698_v33 }
 0x113   : > { %v787_v42 = vadd.f32 %v782_v41, %v699_v1 }
 0x118   : > { %v1091_v45 = vpop.f32.mrb[8].mxu1 }
 0x119   : > { %v1768_v47 = vpop.f32.mrb[9].mxu1 }
 0x11a   : > { %v1094_v48 = vpop.f32.mrb[10].mxu1 }
 0x11b   : > { %v955_v49 = vpop.f32.mrb[8].mxu0  ;;  %v1769_v50 = vpop.f32.mrb[11].mxu1 }
 0x11c   : > { %v962_v51 = vadd.f32 %v955_v49, %v786_v38  ;;  %v1760_v52 = vpop.f32.mrb[9].mxu0 }
 0x11d   : > { %v958_v53 = vpop.f32.mrb[10].mxu0 }
 0x11e   : > { %v963_v54 = vadd.f32 %v958_v53, %v787_v42  ;;  %v1098_v55 = vadd.f32 %v1091_v45, %v962_v51  ;;  %v1761_v56 = vpop.f32.mrb[11].mxu0 }
 0x120   : > { %v1099_v57 = vadd.f32 %v1094_v48, %v963_v54  ;;  %v1356_v58 = vpop.f32.mrb[12].mxu1 }
 0x121   : > { %v1784_v60 = vpop.f32.mrb[13].mxu1 }
 0x122   : > { %v1359_v62 = vpop.f32.mrb[14].mxu1 }
 0x123   : > { %v1180_v63 = vpop.f32.mrb[12].mxu0  ;;  %v1785_v39 = vpop.f32.mrb[15].mxu1 }
 0x124   : > { %v1187_v46 = vadd.f32 %v1180_v63, %v1098_v55  ;;  %v1776_v61 = vpop.f32.mrb[13].mxu0 }
 0x125   : > { %v1183_v0 = vpop.f32.mrb[14].mxu0 }
 0x126   : > { %v1188_v2 = vadd.f32 %v1183_v0, %v1099_v57  ;;  %v1363_v3 = vadd.f32 %v1356_v58, %v1187_v46  ;;  %v1777_v4 = vpop.f32.mrb[15].mxu0 }
 0x128   : > { %v1364_v5 = vadd.f32 %v1359_v62, %v1188_v2 }
 0x12b   : > { %v1492_v8 = vpop.f32.mrb[16].mxu0 }
 0x12c   : > { %v1499_v9 = vadd.f32 %v1492_v8, %v1363_v3  ;;  %v1792_v10 = vpop.f32.mrb[17].mxu0 }
 0x12d   : > { %v1495_v59 = vpop.f32.mrb[18].mxu0 }
 0x12e   : > { %v1508_v12 = vadd.f32 %v1686_v6, %v1499_v9  ;;  %v1500_v13 = vadd.f32 %v1495_v59, %v1364_v5  ;;  %v1793_v14 = vpop.f32.mrb[19].mxu0 }
 0x130   : > { %v1510_v15 = vmax.f32 %v1508_v12, 0.0  ;;  %v1509_v16 = vadd.f32 %v1686_v6, %v1500_v13 }
 0x132   : > { %v1693_v17 = vpack.c.bf16 %v1510_v15, %v1510_v15  ;;  %v1511_v18 = vmax.f32 %v1509_v16, 0.0 }
 0x134   : > { %1521 = vst.msk [vmem:[%s170_s7] sm:$0xf] %vm1520_vm0, %v1693_v17  ;;  %v1694_v20 = vpack.c.bf16 %v1511_v18, %v1511_v18 }
 0x136   : > { %1522 = vst.msk [vmem:[%s170_s7 + $0x4] sm:$0xf] %vm1520_vm0, %v1694_v20 }
 0x137 PF: > { %s13_s12 = sadd.s32 1, %s1842_s12  }
 0x138   : > { %p10_p4 = scmp.ge.s32.totalorder %s13_s12, 4  }
 0x13a   :  { %12 = sbr.rel (!%p10_p4) target bundleno = 1 (0x1), region = 73 }

</bundles_post_ra>
